<compile_context>
chip_gen: v6e
topology: v6e:2x2x1
jax: 0.10.0
libtpu: 0.0.40
codegen_flags: <defaults>
</compile_context>

<pallas_src>
import functools

import jax
import jax.numpy as jnp
from jax.experimental import pallas as pl
from jax.experimental.pallas import tpu as pltpu

# Layer sizes from the PyTorch module.
DIMS = [29, 22, 15, 10, 5, 2]
PAD = 128  # lane padding for hidden feature dims


def _round_up(x, m):
    return ((x + m - 1) // m) * m


def _cdiv(a, b):
    return (a + b - 1) // b


def _mlp_kernel(x_ref, w1_ref, wrest_ref, b_ref, o_ref):
    # Layer 1: cast x to the weight dtype in-kernel (VPU), then MXU matmul
    # [tile, 29] @ [29, 128] with f32 accumulation.
    x = x_ref[...].astype(w1_ref.dtype)
    acc = jnp.dot(x, w1_ref[...], preferred_element_type=jnp.float32)
    acc = acc + b_ref[0:1, :]
    h = jnp.maximum(acc, 0.0)

    # Layers 2..5: [tile, 128] @ [128, 128]; zero padding lanes stay exactly
    # zero through (zero-padded) bias + ReLU.
    for j in range(4):
        acc = jnp.dot(h.astype(wrest_ref.dtype), wrest_ref[j],
                      preferred_element_type=jnp.float32)
        acc = acc + b_ref[j + 1:j + 2, :]
        if j < 3:
            h = jnp.maximum(acc, 0.0)

    # Numerically stable sigmoid: exp of a non-positive argument (no overflow),
    # approx reciprocal of a value in (1, 2] (EUP), select on the VPU.
    e = jnp.exp(-jnp.abs(acc))
    r = pl.reciprocal(1.0 + e, approx=True)
    out = jnp.where(acc >= 0.0, r, e * r)

    o_ref[...] = out[:, :DIMS[-1]].astype(o_ref.dtype)


def pack_params(params, compute_dtype=jnp.bfloat16):
    """Pack per-layer (W [in,out], b [out]) into 3 padded, VMEM-friendly slabs.

    Call ONCE at model-load time; pass the result to classifier_forward.
    NOTE: biases must remain zero-padded so padding lanes stay exactly zero
    through bias + ReLU inside the kernel.
    """
    w1, b1 = params[0]
    w1p = jnp.zeros((DIMS[0], PAD), compute_dtype)
    w1p = w1p.at[:, :DIMS[1]].set(w1.astype(compute_dtype))

    wrest = jnp.zeros((len(DIMS) - 2, PAD, PAD), compute_dtype)
    ball = jnp.zeros((len(DIMS) - 1, PAD), jnp.float32)
    ball = ball.at[0, :DIMS[1]].set(b1.reshape(-1).astype(jnp.float32))
    for j in range(1, len(DIMS) - 1):
        w, b = params[j]
        wrest = wrest.at[j - 1, :DIMS[j], :DIMS[j + 1]].set(
            w.astype(compute_dtype))
        ball = ball.at[j, :DIMS[j + 1]].set(b.reshape(-1).astype(jnp.float32))
    return w1p, wrest, ball


def _choose_tile(batch, max_tile):
    # Small batches: a single grid step covering the whole batch.
    # Large batches: >= 2 steps so the "parallel" grid axis can shard across
    # both TensorCores on v7x (v5e/v6e just see a short sequential loop).
    if batch <= 1024:
        tile = _round_up(batch, 16)
    else:
        tile = _round_up(_cdiv(batch, 2), 16)
    return max(16, min(tile, max_tile))


@functools.partial(jax.jit, static_argnames=("batch_tile",))
def classifier_forward(x, w1p, wrest, ball, *, batch_tile=2048):
    """x: [B, 29] float; (w1p, wrest, ball) from pack_params(). Returns [B, 2] f32."""
    B, f_in = x.shape
    assert f_in == DIMS[0]
    assert batch_tile % 16 == 0

    tile = _choose_tile(B, batch_tile)
    grid = (_cdiv(B, tile),)

    return pl.pallas_call(
        _mlp_kernel,
        out_shape=jax.ShapeDtypeStruct((B, DIMS[-1]), jnp.float32),
        grid_spec=pltpu.PrefetchScalarGridSpec(
            num_scalar_prefetch=0,
            grid=grid,
            in_specs=[
                pl.BlockSpec((tile, DIMS[0]), lambda i: (i, 0)),   # x tile (f32)
                pl.BlockSpec((DIMS[0], PAD), lambda i: (0, 0)),    # w1 slab
                pl.BlockSpec(wrest.shape, lambda i: (0, 0, 0)),    # w2..w5 slab
                pl.BlockSpec(ball.shape, lambda i: (0, 0)),        # bias slab
            ],
            out_specs=pl.BlockSpec((tile, DIMS[-1]), lambda i: (i, 0)),
        ),
        compiler_params=pltpu.CompilerParams(
            dimension_semantics=("parallel",)),
    )(x, w1p, wrest, ball)


def init_params(key):
    """PyTorch-Linear-style init; weights stored as [in, out] (y = x @ W + b)."""
    params = []
    for li in range(len(DIMS) - 1):
        fan_in, fan_out = DIMS[li], DIMS[li + 1]
        key, kw, kb = jax.random.split(key, 3)
        bound = 1.0 / jnp.sqrt(fan_in)
        w = jax.random.uniform(kw, (fan_in, fan_out), jnp.float32, -bound, bound)
        b = jax.random.uniform(kb, (fan_out,), jnp.float32, -bound, bound)
        params.append((w, b))
    return params


def reference_forward(x, params):
    h = x
    n = len(params)
    for i, (w, b) in enumerate(params):
        h = h @ w + b
        h = jnp.maximum(h, 0.0) if i < n - 1 else jax.nn.sigmoid(h)
    return h


if __name__ == "__main__":
    key = jax.random.PRNGKey(0)
    key, kx = jax.random.split(key)
    params = init_params(key)

    # Pack the weight/bias slabs ONCE (model-load time), outside the jit.
    slabs = pack_params(params)

    # Small batch: single grid step; output block larger than the batch
    # (exercises masked boundary writeback instead of wrapper pad/slice).
    x_small = jax.random.normal(kx, (16, DIMS[0]), dtype=jnp.float32)
    out_small = jax.block_until_ready(classifier_forward(x_small, *slabs))
    ref_small = reference_forward(x_small, params)
    assert out_small.shape == (16, DIMS[-1])
    assert jnp.allclose(out_small, ref_small, atol=3e-2), float(
        jnp.max(jnp.abs(out_small - ref_small)))

    # Larger batch that is NOT a multiple of the tile: 2 parallel grid steps
    # (both TensorCores on v7x) with a partial final block.
    key, kx2 = jax.random.split(key)
    x_big = jax.random.normal(kx2, (2500, DIMS[0]), dtype=jnp.float32)
    out_big = jax.block_until_ready(classifier_forward(x_big, *slabs))
    ref_big = reference_forward(x_big, params)
    assert out_big.shape == (2500, DIMS[-1])
    assert jnp.allclose(out_big, ref_big, atol=3e-2), float(
        jnp.max(jnp.abs(out_big - ref_big)))

    print("KERNEL_OK")
</pallas_src>

<mosaic_0001>
module attributes {stable_mosaic.version = 11 : i64} {
  func.func @_mlp_kernel(%arg0: i32, %arg1: memref<16x29xf32, #tpu.memory_space<vmem>>, %arg2: memref<29x128xbf16, #tpu.memory_space<vmem>>, %arg3: memref<4x128x128xbf16, #tpu.memory_space<vmem>>, %arg4: memref<5x128xf32, #tpu.memory_space<vmem>>, %arg5: memref<16x2xf32, #tpu.memory_space<vmem>>) attributes {dimension_semantics = [#tpu.dimension_semantics<parallel>], iteration_bounds = array<i64: 1>, scalar_prefetch = 0 : i64, scratch_operands = 0 : i64, tpu.core_type = #tpu.core_type<tc>, window_params = [{transform_indices = @transform_0, window_bounds = array<i64: 16, 29>}, {pipeline_mode = #tpu.pipeline_mode<synchronous>, transform_indices = @transform_1, window_bounds = array<i64: 29, 128>}, {pipeline_mode = #tpu.pipeline_mode<synchronous>, transform_indices = @transform_2, window_bounds = array<i64: 4, 128, 128>}, {pipeline_mode = #tpu.pipeline_mode<synchronous>, transform_indices = @transform_3, window_bounds = array<i64: 5, 128>}, {transform_indices = @transform_4, window_bounds = array<i64: 16, 2>}]} {
    %c0 = arith.constant 0 : index
    %c0_0 = arith.constant 0 : index
    %0 = vector.load %arg1[%c0, %c0_0] : memref<16x29xf32, #tpu.memory_space<vmem>>, vector<16x29xf32>
    %1 = arith.truncf %0 : vector<16x29xf32> to vector<16x29xbf16>
    %c0_1 = arith.constant 0 : index
    %c0_2 = arith.constant 0 : index
    %2 = vector.load %arg2[%c0_1, %c0_2] : memref<29x128xbf16, #tpu.memory_space<vmem>>, vector<29x128xbf16>
    %cst = arith.constant dense<0.000000e+00> : vector<16x128xf32>
    %3 = tpu.matmul %1, %2, %cst {dimension_numbers = #tpu.dot_dimension_numbers<[1], [0], [0], [1], [0, 0, 1, 1], [], []>} : vector<16x29xbf16>, vector<29x128xbf16>, vector<16x128xf32> -> vector<16x128xf32>
    %c0_3 = arith.constant 0 : index
    %c0_4 = arith.constant 0 : index
    %4 = vector.load %arg4[%c0_3, %c0_4] : memref<5x128xf32, #tpu.memory_space<vmem>>, vector<1x128xf32>
    %5 = vector.broadcast %4 : vector<1x128xf32> to vector<16x128xf32>
    %6 = arith.addf %3, %5 : vector<16x128xf32>
    %cst_5 = arith.constant 0.000000e+00 : f32
    %7 = vector.broadcast %cst_5 : f32 to vector<16x128xf32>
    %8 = arith.maximumf %6, %7 : vector<16x128xf32>
    %9 = arith.truncf %8 : vector<16x128xf32> to vector<16x128xbf16>
    %c0_6 = arith.constant 0 : index
    %c0_7 = arith.constant 0 : index
    %c0_8 = arith.constant 0 : index
    %10 = vector.load %arg3[%c0_6, %c0_7, %c0_8] : memref<4x128x128xbf16, #tpu.memory_space<vmem>>, vector<1x128x128xbf16>
    %11 = vector.shape_cast %10 : vector<1x128x128xbf16> to vector<128x128xbf16>
    %cst_9 = arith.constant dense<0.000000e+00> : vector<16x128xf32>
    %12 = tpu.matmul %9, %11, %cst_9 {dimension_numbers = #tpu.dot_dimension_numbers<[1], [0], [0], [1], [0, 0, 1, 1], [], []>} : vector<16x128xbf16>, vector<128x128xbf16>, vector<16x128xf32> -> vector<16x128xf32>
    %c1 = arith.constant 1 : index
    %c0_10 = arith.constant 0 : index
    %13 = vector.load %arg4[%c1, %c0_10] : memref<5x128xf32, #tpu.memory_space<vmem>>, vector<1x128xf32>
    %14 = vector.broadcast %13 : vector<1x128xf32> to vector<16x128xf32>
    %15 = arith.addf %12, %14 : vector<16x128xf32>
    %cst_11 = arith.constant 0.000000e+00 : f32
    %16 = vector.broadcast %cst_11 : f32 to vector<16x128xf32>
    %17 = arith.maximumf %15, %16 : vector<16x128xf32>
    %18 = arith.truncf %17 : vector<16x128xf32> to vector<16x128xbf16>
    %c1_12 = arith.constant 1 : index
    %c0_13 = arith.constant 0 : index
    %c0_14 = arith.constant 0 : index
    %19 = vector.load %arg3[%c1_12, %c0_13, %c0_14] : memref<4x128x128xbf16, #tpu.memory_space<vmem>>, vector<1x128x128xbf16>
    %20 = vector.shape_cast %19 : vector<1x128x128xbf16> to vector<128x128xbf16>
    %cst_15 = arith.constant dense<0.000000e+00> : vector<16x128xf32>
    %21 = tpu.matmul %18, %20, %cst_15 {dimension_numbers = #tpu.dot_dimension_numbers<[1], [0], [0], [1], [0, 0, 1, 1], [], []>} : vector<16x128xbf16>, vector<128x128xbf16>, vector<16x128xf32> -> vector<16x128xf32>
    %c2 = arith.constant 2 : index
    %c0_16 = arith.constant 0 : index
    %22 = vector.load %arg4[%c2, %c0_16] : memref<5x128xf32, #tpu.memory_space<vmem>>, vector<1x128xf32>
    %23 = vector.broadcast %22 : vector<1x128xf32> to vector<16x128xf32>
    %24 = arith.addf %21, %23 : vector<16x128xf32>
    %cst_17 = arith.constant 0.000000e+00 : f32
    %25 = vector.broadcast %cst_17 : f32 to vector<16x128xf32>
    %26 = arith.maximumf %24, %25 : vector<16x128xf32>
    %27 = arith.truncf %26 : vector<16x128xf32> to vector<16x128xbf16>
    %c2_18 = arith.constant 2 : index
    %c0_19 = arith.constant 0 : index
    %c0_20 = arith.constant 0 : index
    %28 = vector.load %arg3[%c2_18, %c0_19, %c0_20] : memref<4x128x128xbf16, #tpu.memory_space<vmem>>, vector<1x128x128xbf16>
    %29 = vector.shape_cast %28 : vector<1x128x128xbf16> to vector<128x128xbf16>
    %cst_21 = arith.constant dense<0.000000e+00> : vector<16x128xf32>
    %30 = tpu.matmul %27, %29, %cst_21 {dimension_numbers = #tpu.dot_dimension_numbers<[1], [0], [0], [1], [0, 0, 1, 1], [], []>} : vector<16x128xbf16>, vector<128x128xbf16>, vector<16x128xf32> -> vector<16x128xf32>
    %c3 = arith.constant 3 : index
    %c0_22 = arith.constant 0 : index
    %31 = vector.load %arg4[%c3, %c0_22] : memref<5x128xf32, #tpu.memory_space<vmem>>, vector<1x128xf32>
    %32 = vector.broadcast %31 : vector<1x128xf32> to vector<16x128xf32>
    %33 = arith.addf %30, %32 : vector<16x128xf32>
    %cst_23 = arith.constant 0.000000e+00 : f32
    %34 = vector.broadcast %cst_23 : f32 to vector<16x128xf32>
    %35 = arith.maximumf %33, %34 : vector<16x128xf32>
    %36 = arith.truncf %35 : vector<16x128xf32> to vector<16x128xbf16>
    %c3_24 = arith.constant 3 : index
    %c0_25 = arith.constant 0 : index
    %c0_26 = arith.constant 0 : index
    %37 = vector.load %arg3[%c3_24, %c0_25, %c0_26] : memref<4x128x128xbf16, #tpu.memory_space<vmem>>, vector<1x128x128xbf16>
    %38 = vector.shape_cast %37 : vector<1x128x128xbf16> to vector<128x128xbf16>
    %cst_27 = arith.constant dense<0.000000e+00> : vector<16x128xf32>
    %39 = tpu.matmul %36, %38, %cst_27 {dimension_numbers = #tpu.dot_dimension_numbers<[1], [0], [0], [1], [0, 0, 1, 1], [], []>} : vector<16x128xbf16>, vector<128x128xbf16>, vector<16x128xf32> -> vector<16x128xf32>
    %c4 = arith.constant 4 : index
    %c0_28 = arith.constant 0 : index
    %40 = vector.load %arg4[%c4, %c0_28] : memref<5x128xf32, #tpu.memory_space<vmem>>, vector<1x128xf32>
    %41 = vector.broadcast %40 : vector<1x128xf32> to vector<16x128xf32>
    %42 = arith.addf %39, %41 : vector<16x128xf32>
    %43 = math.absf %42 : vector<16x128xf32>
    %cst_29 = arith.constant 0.000000e+00 : f32
    %44 = vector.broadcast %cst_29 : f32 to vector<16x128xf32>
    %45 = arith.subf %44, %43 : vector<16x128xf32>
    %46 = math.exp %45 : vector<16x128xf32>
    %cst_30 = arith.constant 1.000000e+00 : f32
    %47 = vector.broadcast %cst_30 : f32 to vector<16x128xf32>
    %48 = arith.addf %47, %46 : vector<16x128xf32>
    %49 = tpu.reciprocal %48 {approx = true} : vector<16x128xf32> -> vector<16x128xf32>
    %cst_31 = arith.constant 0.000000e+00 : f32
    %50 = vector.broadcast %cst_31 : f32 to vector<16x128xf32>
    %51 = arith.cmpf oge, %42, %50 : vector<16x128xf32>
    %52 = arith.mulf %46, %49 : vector<16x128xf32>
    %53 = arith.select %51, %49, %52 : vector<16x128xi1>, vector<16x128xf32>
    %54 = vector.extract_strided_slice %53 {offsets = [0, 0], sizes = [16, 2], strides = [1, 1]} : vector<16x128xf32> to vector<16x2xf32>
    %c0_32 = arith.constant 0 : index
    %c0_33 = arith.constant 0 : index
    %55 = vector.load %arg5[%c0_32, %c0_33] : memref<16x2xf32, #tpu.memory_space<vmem>>, vector<16x2xf32>
    tpu.vector_store %arg5[%c0_32, %c0_33], %54 {strides = array<i32>} : memref<16x2xf32, #tpu.memory_space<vmem>>, vector<16x2xf32>,
    return
  }
  func.func @transform_0(%arg0: i32) -> (i32, i32) {
    %c0_i32 = arith.constant 0 : i32
    %c0_i32_0 = arith.constant 0 : i32
    return %arg0, %c0_i32 : i32, i32
  }
  func.func @transform_1(%arg0: i32) -> (i32, i32) {
    %c0_i32 = arith.constant 0 : i32
    %c0_i32_0 = arith.constant 0 : i32
    %c0_i32_1 = arith.constant 0 : i32
    return %c0_i32, %c0_i32_0 : i32, i32
  }
  func.func @transform_2(%arg0: i32) -> (i32, i32, i32) {
    %c0_i32 = arith.constant 0 : i32
    %c0_i32_0 = arith.constant 0 : i32
    %c0_i32_1 = arith.constant 0 : i32
    %c0_i32_2 = arith.constant 0 : i32
    return %c0_i32, %c0_i32_0, %c0_i32_1 : i32, i32, i32
  }
  func.func @transform_3(%arg0: i32) -> (i32, i32) {
    %c0_i32 = arith.constant 0 : i32
    %c0_i32_0 = arith.constant 0 : i32
    %c0_i32_1 = arith.constant 0 : i32
    return %c0_i32, %c0_i32_0 : i32, i32
  }
  func.func @transform_4(%arg0: i32) -> (i32, i32) {
    %c0_i32 = arith.constant 0 : i32
    %c0_i32_0 = arith.constant 0 : i32
    return %arg0, %c0_i32 : i32, i32
  }
}

</mosaic_0001>

<bundles_post_ra>
// kernel: classifier_forward.1
= control target key start
LH: loop header
LB: loop body
LE: loop exit
PB: predicated region body
PF: predicated region fallthrough
CT: control target
= control target key end

     0   :  { %9 = vsyncpa [#allocation3], 0  ;;  %s1039_s0 = inlined_call_operand.hbm [shape: f32[16,29], index: 0, kind: input, shape index: {}]   ;;  %s1040_s1 = inlined_call_operand.hbm [shape: bf16[29,128], index: 1, kind: input, shape index: {}]   ;;  %s1041_s2 = inlined_call_operand.hbm [shape: bf16[4,128,128], index: 2, kind: input, shape index: {}]   ;;  %s1042_s3 = inlined_call_operand.hbm [shape: f32[5,128], index: 3, kind: input, shape index: {}]   ;;  %s1043_s4 = inlined_call_operand.vmem [shape: f32[16,2], index: 4, kind: output, shape index: {}]  }
   0x1   :  { %10 = vsyncpa [#allocation5], 0 }
   0x2   :  { %11 = vsyncpa [#allocation8], 0  ;;  %s935_s15 = smov [#allocation4]  }
   0x3   :  { %s29_s16 = sshll.u32 %s935_s15, 4  ;;  %s30_s16 = int_to_ptr.vmem [resolvable:$true] %s29_s16 }
   0x4   :  { %s857_s17 = scalar_lea.vmem %s30_s16, 256  ;;  %p862_p1 = scmp.lt.s32.totalorder %s30_s16, %s30_s16 }
   0x5   :  { %p858_p0 = scmp.ne.s32.totalorder %s30_s16, %s857_s17  ;;  %p863_p2 = scmp.lt.s32.totalorder %s857_s17, %s857_s17 }
   0x7   :  { %p864_p3 = por %p863_p2, %p862_p1 }
   0x9   :  { %p865_p4 = pnand %p864_p3, %p858_p0 }
   0xb   :  { %868 = shalt.err (!%p865_p4)
}
   0xc   :  { %s936_s18 = smov 64   ;;  %s937_s19 = smov 4  }
   0xd   :  { %35 = dma.hbm_to_vmem [thread:$0]  %s1040_s1, 256, %s30_s16, [#allocation5], %s936_s18, %s936_s18, %s937_s19  }
   0xe   :  { %s938_s22 = smov [#allocation2]  }
   0xf   :  { %s17_s23 = sshll.u32 %s938_s22, 4  ;;  %s18_s23 = int_to_ptr.vmem [resolvable:$true] %s17_s23 }
  0x10   :  { %s877_s24 = scalar_lea.vmem %s18_s23, 256  ;;  %p882_p6 = scmp.lt.s32.totalorder %s18_s23, %s18_s23 }
  0x11   :  { %p878_p5 = scmp.ne.s32.totalorder %s18_s23, %s877_s24  ;;  %p883_p7 = scmp.lt.s32.totalorder %s877_s24, %s877_s24 }
  0x13   :  { %p884_p8 = por %p883_p7, %p882_p6 }
  0x15   :  { %p885_p9 = pnand %p884_p8, %p878_p5 }
  0x17   :  { %888 = shalt.err (!%p885_p9)
}
  0x18   :  { %s939_s25 = smov 128   ;;  %s940_s26 = smov 8  }
  0x19   :  { %23 = dma.hbm_to_vmem [thread:$0]  %s1039_s0, 256, %s18_s23, [#allocation3], %s939_s25, %s939_s25, %s940_s26  }
  0x1a   :  { %s941_s29 = smov [#allocation6]   ;;  %s942_s5 = smov [#allocation7]  }
  0x1b   :  { %s41_s30 = sshll.u32 %s941_s29, 4  ;;  %s54_s1 = sshll.u32 %s942_s5, 4  ;;  %s42_s30 = int_to_ptr.vmem [resolvable:$true] %s41_s30  ;;  %s55_s1 = int_to_ptr.vmem [resolvable:$true] %s54_s1 }
  0x1c   :  { %s897_s6 = scalar_lea.vmem %s42_s30, 4096  ;;  %p902_p11 = scmp.lt.s32.totalorder %s42_s30, %s42_s30 }
  0x1d   :  { %p898_p10 = scmp.ne.s32.totalorder %s42_s30, %s897_s6  ;;  %p903_p12 = scmp.lt.s32.totalorder %s897_s6, %s897_s6 }
  0x1f   :  { %p904_p13 = por %p903_p12, %p902_p11 }
  0x21   :  { %p905_p0 = pnand %p904_p13, %p898_p10 }
  0x23   :  { %908 = shalt.err (!%p905_p0)
}
  0x24   :  { %47 = dma.hbm_to_vmem [thread:$0]  %s1041_s2, 4096, %s42_s30, [#allocation5], %s936_s18, %s936_s18, %s937_s19  }
  0x25   :  { %s917_s0 = scalar_lea.vmem %s55_s1, 128  ;;  %p922_p2 = scmp.lt.s32.totalorder %s55_s1, %s55_s1 }
  0x26   :  { %p918_p1 = scmp.ne.s32.totalorder %s55_s1, %s917_s0  ;;  %p923_p3 = scmp.lt.s32.totalorder %s917_s0, %s917_s0 }
  0x28   :  { %p924_p4 = por %p923_p3, %p922_p2 }
  0x2a   :  { %p925_p5 = pnand %p924_p4, %p918_p1 }
  0x2c   :  { %928 = shalt.err (!%p925_p5)
}
  0x2d   :  { %57 = dma.hbm_to_vmem [thread:$0]  %s1042_s3, 128, %s55_s1, [#allocation8]  }
  0x2e   :  { %929 = dma.done.wait [#allocation3], 256  }
  0x2f   :  { %930 = vsyncadd [#allocation3], 4294967040 }
  0x30   :  { %931 = dma.done.wait [#allocation5], 4352  }
  0x31   :  { %932 = vsyncadd [#allocation5], 4294962944 }
  0x32   :  { %933 = dma.done.wait [#allocation8], 128  }
  0x33   :  { %934 = vsyncadd [#allocation8], 4294967168  ;;  %vm98_vm0 = vcmask 1045504   ;;  %v943_v0 = vmov 0.0   ;;  %vm944_vm1 = vmmov 0   ;;  %vm99_vm2 = vcmask 1046528  }
  0x34   :  { %708 = vmatprep.subr.bf16.mxu0 %v943_v0  ;;  %716 = vmatprep.subr.bf16.mxu1 %v943_v0  ;;  %v945_v1 = vmov 65535   ;;  %v807_v4 = vld [vmem:[#allocation4 + $0x8] sm:$0x7f]   ;;  %v808_v6 = vld [vmem:[#allocation4] sm:$0xff]   ;;  %v71_v7 = vld [vmem:[#allocation2] sm:$0xff]  ;;  %vm94_vm3 = vcmask 236544  }
  0x35   :  { %712 = vmatprep.mubr.msk.bf16.mxu0 %vm944_vm1, %v943_v0  ;;  %732 = vmatprep.mubr.msk.bf16.mxu1 %vm944_vm1, %v943_v0  ;;  %v100_v2 = vsel %vm98_vm0, 4294967295, %v945_v1  ;;  %v809_v8 = vld [vmem:[#allocation6 + $0x38] sm:$0xff]   ;;  %v72_v9 = vld [vmem:[#allocation2 + $0x8] sm:$0xff]  ;;  %v810_v10 = vld [vmem:[#allocation6 + $0x30] sm:$0xff]   ;;  %vm619_vm4 = vcmask 15360  }
  0x36   :  { %v101_v3 = vsel %vm99_vm2, %v100_v2, 0  ;;  %717 = vmatpush3.bf16.msra.mxu1 %v809_v8  ;;  %v73_v11 = vpack.c.bf16 %v72_v9, %v71_v7  ;;  %v811_v12 = vld [vmem:[#allocation6 + $0x28] sm:$0xff]   ;;  %v812_v13 = vld [vmem:[#allocation6 + $0x20] sm:$0xff]   ;;  %v813_v14 = vld [vmem:[#allocation6 + $0x18] sm:$0xff]  }
  0x37   :  { %v103_v5 = vand.u32 %v807_v4, %v101_v3  ;;  %718 = vmatprep.subr.bf16.mxu1 %v943_v0  ;;  %v814_v15 = vld [vmem:[#allocation6 + $0x10] sm:$0xff]   ;;  %v815_v16 = vld [vmem:[#allocation6 + $0x8] sm:$0xff]   ;;  %v816_v17 = vld [vmem:[#allocation6] sm:$0xff]  }
  0x38   :  { %v817_v18 = vld [vmem:[#allocation6 + $0x78] sm:$0xff]   ;;  %v818_v19 = vld [vmem:[#allocation6 + $0x70] sm:$0xff]   ;;  %v819_v20 = vld [vmem:[#allocation6 + $0x68] sm:$0xff]  }
  0x39   :  { %709 = vmatpush3.bf16.msra.mxu0 %v103_v5  ;;  %v820_v21 = vld [vmem:[#allocation6 + $0x60] sm:$0xff]   ;;  %v821_v22 = vld [vmem:[#allocation6 + $0x58] sm:$0xff]   ;;  %v822_v33 = vld [vmem:[#allocation6 + $0x50] sm:$0xff]  }
  0x3a   :  { %710 = vmatprep.subr.bf16.mxu0 %v943_v0  ;;  %719 = vmatpush3.bf16.msra.mxu1 %v810_v10  ;;  %v629_v23 = vld [vmem:[#allocation7] ss:$0 sm:$0xff]  ;;  %v823_v34 = vld [vmem:[#allocation6 + $0x48] sm:$0xff]   ;;  %v825_v36 = vld [vmem:[#allocation6 + $0xb8] sm:$0xff]  }
  0x3b   :  { %720 = vmatprep.subr.bf16.mxu1 %v943_v0  ;;  %v824_v35 = vld [vmem:[#allocation6 + $0x40] sm:$0xff]   ;;  %v826_v37 = vld [vmem:[#allocation6 + $0xb0] sm:$0xff]   ;;  %v827_v38 = vld [vmem:[#allocation6 + $0xa8] sm:$0xff]  }
  0x3c   :  { %v828_v39 = vld [vmem:[#allocation6 + $0xa0] sm:$0xff]   ;;  %v829_v40 = vld [vmem:[#allocation6 + $0x98] sm:$0xff]   ;;  %v830_v51 = vld [vmem:[#allocation6 + $0x90] sm:$0xff]  }
  0x3d   :  { %711 = vmatpush3.bf16.msra.mxu0 %v808_v6  ;;  %v633_v41 = vld [vmem:[#allocation7 + $0x1] ss:$0 sm:$0xff]  ;;  %v831_v52 = vld [vmem:[#allocation6 + $0x88] sm:$0xff]   ;;  %v833_v54 = vld [vmem:[#allocation6 + $0xf8] sm:$0xff]  }
  0x3e   :  { %736 = vmatprep.subr.bf16.mxu0 %v943_v0  ;;  %721 = vmatpush3.bf16.msra.mxu1 %v811_v12  ;;  %v832_v53 = vld [vmem:[#allocation6 + $0x80] sm:$0xff]   ;;  %v834_v55 = vld [vmem:[#allocation6 + $0xf0] sm:$0xff]   ;;  %v835_v56 = vld [vmem:[#allocation6 + $0xe8] sm:$0xff]  }
  0x3f   :  { %722 = vmatprep.subr.bf16.mxu1 %v943_v0  ;;  %v836_v57 = vld [vmem:[#allocation6 + $0xe0] sm:$0xff]   ;;  %v837_v58 = vld [vmem:[#allocation6 + $0xd8] sm:$0xff]   ;;  %v838_v6 = vld [vmem:[#allocation6 + $0xd0] sm:$0xff]  }
  0x40   :  { %713 = vmatmul.mubr.msk.bf16.vlgmr.msra.gmra.mxu0 %vm94_vm3, %v73_v11  ;;  %v642_v59 = vld [vmem:[#allocation7 + $0x2] ss:$0 sm:$0xff]  ;;  %v839_v7 = vld [vmem:[#allocation6 + $0xc8] sm:$0xff]   ;;  %v651_v9 = vld [vmem:[#allocation7 + $0x3] ss:$0 sm:$0xff] }
  0x41   :  { %752 = vmatprep.mubr.msk.bf16.mxu0 %vm944_vm1, %v943_v0  ;;  %737 = vmatpush3.bf16.msra.mxu0 %v817_v18  ;;  %v840_v8 = vld [vmem:[#allocation6 + $0xc0] sm:$0xff]  }
  0x42   :  { %723 = vmatpush3.bf16.msra.mxu1 %v812_v13  ;;  %738 = vmatprep.subr.bf16.mxu0 %v943_v0 }
  0x43   :  { %724 = vmatprep.subr.bf16.mxu1 %v943_v0 }
  0x45   :  { %739 = vmatpush3.bf16.msra.mxu0 %v818_v19  ;;  %v660_v19 = vld [vmem:[#allocation7 + $0x4] ss:$0 sm:$0xff] }
  0x46   :  { %725 = vmatpush3.bf16.msra.mxu1 %v813_v14  ;;  %740 = vmatprep.subr.bf16.mxu0 %v943_v0 }
  0x47   :  { %726 = vmatprep.subr.bf16.mxu1 %v943_v0 }
  0x49   :  { %741 = vmatpush3.bf16.msra.mxu0 %v819_v20 }
  0x4a   :  { %727 = vmatpush3.bf16.msra.mxu1 %v814_v15  ;;  %742 = vmatprep.subr.bf16.mxu0 %v943_v0 }
  0x4b   :  { %728 = vmatprep.subr.bf16.mxu1 %v943_v0 }
  0x4d   :  { %743 = vmatpush3.bf16.msra.mxu0 %v820_v21 }
  0x4e   :  { %729 = vmatpush3.bf16.msra.mxu1 %v815_v16  ;;  %744 = vmatprep.subr.bf16.mxu0 %v943_v0 }
  0x4f   :  { %730 = vmatprep.subr.bf16.mxu1 %v943_v0 }
  0x51   :  { %745 = vmatpush3.bf16.msra.mxu0 %v821_v22 }
  0x52   :  { %731 = vmatpush3.bf16.msra.mxu1 %v816_v17  ;;  %746 = vmatprep.subr.bf16.mxu0 %v943_v0 }
  0x53   :  { %756 = vmatprep.subr.bf16.mxu1 %v943_v0 }
  0x55   :  { %747 = vmatpush3.bf16.msra.mxu0 %v822_v33 }
  0x56   :  { %748 = vmatprep.subr.bf16.mxu0 %v943_v0 }
  0x59   :  { %749 = vmatpush3.bf16.msra.mxu0 %v823_v34 }
  0x5a   :  { %750 = vmatprep.subr.bf16.mxu0 %v943_v0 }
  0x5d   :  { %751 = vmatpush3.bf16.msra.mxu0 %v824_v35 }
  0x5e   :  { %776 = vmatprep.subr.bf16.mxu0 %v943_v0 }
 0x100   :  { %v139_v24 = vpop.f32.mrf.mxu0 }
 0x101   :  { %v140_v26 = vadd.f32 %v629_v23, %v139_v24 }
 0x102   :  { %v714_v25 = vpop.f32.mrf.mxu0 }
 0x103   :  { %v146_v30 = vmax.f32 %v140_v26, 0.0 }
 0x104   :  { %v142_v27 = vpop.f32.mrf.mxu0 }
 0x105   :  { %v143_v28 = vadd.f32 %v629_v23, %v142_v27 }
 0x106   :  { %v715_v29 = vpop.f32.mrf.mxu0 }
 0x107   :  { %v147_v31 = vmax.f32 %v143_v28, 0.0 }
 0x109   :  { %v148_v32 = vpack.c.bf16 %v147_v31, %v146_v30 }
 0x10b   :  { %733 = vmatmul.mubr.bf16.vlgmr.msra.gmra.mxu1 %v148_v32 }
 0x10c   :  { %772 = vmatprep.mubr.msk.bf16.mxu1 %vm944_vm1, %v943_v0  ;;  %757 = vmatpush3.bf16.msra.mxu1 %v825_v36 }
 0x10d   :  { %758 = vmatprep.subr.bf16.mxu1 %v943_v0 }
 0x110   :  { %759 = vmatpush3.bf16.msra.mxu1 %v826_v37 }
 0x111   :  { %760 = vmatprep.subr.bf16.mxu1 %v943_v0 }
 0x114   :  { %761 = vmatpush3.bf16.msra.mxu1 %v827_v38 }
 0x115   :  { %762 = vmatprep.subr.bf16.mxu1 %v943_v0 }
 0x118   :  { %763 = vmatpush3.bf16.msra.mxu1 %v828_v39 }
 0x119   :  { %764 = vmatprep.subr.bf16.mxu1 %v943_v0 }
 0x11c   :  { %765 = vmatpush3.bf16.msra.mxu1 %v829_v40 }
 0x11d   :  { %766 = vmatprep.subr.bf16.mxu1 %v943_v0 }
 0x120   :  { %767 = vmatpush3.bf16.msra.mxu1 %v830_v51 }
 0x121   :  { %768 = vmatprep.subr.bf16.mxu1 %v943_v0 }
 0x124   :  { %769 = vmatpush3.bf16.msra.mxu1 %v831_v52 }
 0x125   :  { %770 = vmatprep.subr.bf16.mxu1 %v943_v0 }
 0x128   :  { %771 = vmatpush3.bf16.msra.mxu1 %v832_v53 }
 0x1cb   :  { %v252_v42 = vpop.f32.mrf.mxu1 }
 0x1cc   :  { %v253_v44 = vadd.f32 %v633_v41, %v252_v42 }
 0x1cd   :  { %v734_v43 = vpop.f32.mrf.mxu1 }
 0x1ce   :  { %v259_v48 = vmax.f32 %v253_v44, 0.0 }
 0x1cf   :  { %v255_v45 = vpop.f32.mrf.mxu1 }
 0x1d0   :  { %v256_v46 = vadd.f32 %v633_v41, %v255_v45 }
 0x1d1   :  { %v735_v47 = vpop.f32.mrf.mxu1 }
 0x1d2   :  { %v260_v49 = vmax.f32 %v256_v46, 0.0 }
 0x1d4   :  { %v261_v50 = vpack.c.bf16 %v260_v49, %v259_v48 }
 0x1d6   :  { %753 = vmatmul.mubr.bf16.vlgmr.msra.gmra.mxu0 %v261_v50 }
 0x1d7   :  { %792 = vmatprep.mubr.msk.bf16.mxu0 %vm944_vm1, %v943_v0  ;;  %777 = vmatpush3.bf16.msra.mxu0 %v833_v54 }
 0x1d8   :  { %778 = vmatprep.subr.bf16.mxu0 %v943_v0 }
 0x1db   :  { %779 = vmatpush3.bf16.msra.mxu0 %v834_v55 }
 0x1dc   :  { %780 = vmatprep.subr.bf16.mxu0 %v943_v0 }
 0x1df   :  { %781 = vmatpush3.bf16.msra.mxu0 %v835_v56 }
 0x1e0   :  { %782 = vmatprep.subr.bf16.mxu0 %v943_v0 }
 0x1e3   :  { %783 = vmatpush3.bf16.msra.mxu0 %v836_v57 }
 0x1e4   :  { %784 = vmatprep.subr.bf16.mxu0 %v943_v0 }
 0x1e7   :  { %785 = vmatpush3.bf16.msra.mxu0 %v837_v58 }
 0x1e8   :  { %786 = vmatprep.subr.bf16.mxu0 %v943_v0 }
 0x1eb   :  { %787 = vmatpush3.bf16.msra.mxu0 %v838_v6 }
 0x1ec   :  { %788 = vmatprep.subr.bf16.mxu0 %v943_v0 }
 0x1ef   :  { %789 = vmatpush3.bf16.msra.mxu0 %v839_v7 }
 0x1f0   :  { %790 = vmatprep.subr.bf16.mxu0 %v943_v0 }
 0x1f3   :  { %791 = vmatpush3.bf16.msra.mxu0 %v840_v8 }
 0x296   :  { %v366_v60 = vpop.f32.mrf.mxu0 }
 0x297   :  { %v367_v62 = vadd.f32 %v642_v59, %v366_v60 }
 0x298   :  { %v754_v61 = vpop.f32.mrf.mxu0 }
 0x299   :  { %v373_v3 = vmax.f32 %v367_v62, 0.0 }
 0x29a   :  { %v369_v63 = vpop.f32.mrf.mxu0 }
 0x29b   :  { %v370_v1 = vadd.f32 %v642_v59, %v369_v63 }
 0x29c   :  { %v755_v2 = vpop.f32.mrf.mxu0 }
 0x29d   :  { %v374_v4 = vmax.f32 %v370_v1, 0.0 }
 0x29f   :  { %v375_v5 = vpack.c.bf16 %v374_v4, %v373_v3 }
 0x2a1   :  { %773 = vmatmul.mubr.bf16.vlgmr.msra.gmra.mxu1 %v375_v5 }
 0x361   :  { %v480_v10 = vpop.f32.mrf.mxu1 }
 0x362   :  { %v481_v12 = vadd.f32 %v651_v9, %v480_v10 }
 0x363   :  { %v774_v11 = vpop.f32.mrf.mxu1 }
 0x364   :  { %v487_v16 = vmax.f32 %v481_v12, 0.0 }
 0x365   :  { %v483_v13 = vpop.f32.mrf.mxu1 }
 0x366   :  { %v484_v14 = vadd.f32 %v651_v9, %v483_v13 }
 0x367   :  { %v775_v15 = vpop.f32.mrf.mxu1 }
 0x368   :  { %v488_v17 = vmax.f32 %v484_v14, 0.0 }
 0x36a   :  { %v489_v18 = vpack.c.bf16 %v488_v17, %v487_v16 }
 0x36c   :  { %793 = vmatmul.mubr.bf16.vlgmr.msra.gmra.mxu0 %v489_v18 }
 0x42c   :  { %v594_v20 = vpop.f32.mrf.mxu0 }
 0x42d   :  { %v595_v21 = vadd.f32 %v660_v19, %v594_v20 }
 0x42e   :  { %v794_v22 = vpop.f32.mrf.mxu0 }
 0x42f   :  { %v601_v23 = vand.u32 2147483647, %v595_v21  ;;  %vm613_vm5 = vcmp.ge.f32.partialorder %v595_v21, 0.0 }
 0x430   :  { %v597_v24 = vpop.f32.mrf.mxu0 }
 0x431   :  { %v603_v0 = vsub.f32 0.0, %v601_v23  ;;  %v598_v25 = vadd.f32 %v660_v19, %v597_v24 }
 0x432   :  { %v795_v26 = vpop.f32.mrf.mxu0 }
 0x433   :  { %v605_v27 = vmul.f32 1.442695, %v603_v0  ;;  %v602_v28 = vand.u32 2147483647, %v598_v25  ;;  %vm614_vm6 = vcmp.ge.f32.partialorder %v598_v25, 0.0 }
 0x435   :  { %841 = vpow2.f32 %v605_v27  ;;  %v604_v29 = vsub.f32 0.0, %v602_v28 }
 0x437   :  { %v607_v30 = vmul.f32 1.442695, %v604_v29 }
 0x439   :  { %843 = vpow2.f32 %v607_v30 }
 0x442   :  { %v842_v31 = vpop.eup %841 }
 0x443   :  { %v609_v32 = vadd.f32 1.0, %v842_v31 }
 0x445   :  { %845 = vrcp.f32 %v609_v32 }
 0x446   :  { %v844_v33 = vpop.eup %843 }
 0x447   :  { %v610_v34 = vadd.f32 1.0, %v844_v33 }
 0x449   :  { %847 = vrcp.f32 %v610_v34 }
 0x452   :  { %v846_v35 = vpop.eup %845 }
 0x453   :  { %v615_v36 = vmul.f32 %v846_v35, %v842_v31 }
 0x455   :  { %v617_v37 = vsel %vm613_vm5, %v846_v35, %v615_v36 }
 0x456   :  { %v848_v38 = vpop.eup %847  ;;  %620 = vst.msk [vmem:[%s1043_s4] sm:$0xff] %vm619_vm4, %v617_v37 }
 0x457   :  { %v616_v39 = vmul.f32 %v848_v38, %v844_v33 }
 0x459   :  { %v618_v40 = vsel %vm614_vm6, %v848_v38, %v616_v39 }
 0x45a   :  { %621 = vst.msk [vmem:[%s1043_s4 + $0x8] sm:$0xff] %vm619_vm4, %v618_v40 }
 0x45b   :  { %626 = vsyncpa [#allocation3], 1 }
 0x45c   :  { %627 = vsyncpa [#allocation5], 1 }
 0x45d   :  { %628 = vsyncpa [#allocation8], 1 }

</bundles_post_ra>
